<compile_context>
chip_gen: v7x
topology: tpu7x:2x2x1
jax: 0.10.0
libtpu: 0.0.40
codegen_flags: <defaults>
</compile_context>

<pallas_src>
import functools

import jax
import jax.numpy as jnp
from jax.experimental import pallas as pl
from jax.experimental.pallas import tpu as pltpu


def _fbasic_kernel(x_ref, t1_ref, t2_ref, t3_ref, sr_ref, sb_ref,
                   g1_ref, b1_ref, g2_ref, b2_ref, g3_ref, b3_ref,
                   out_ref, *, rows_per_image, inv_count, eps, neg_slope):
    """Fused 3x(conv3x3 -> BN(train) -> LeakyReLU) + residual, lane-dense layout.

    x_ref  : (N*H/R, R*W*C)          activations, lane-dense (lane = R*W*C, multiple of 128)
    t*_ref : (3*R*W*C, R*W*C)        fused block-Toeplitz conv weights (bf16)
    sr_ref : (R*W*C, C)              per-channel reduction matrix (BN stats)
    sb_ref : (C, R*W*C)              per-channel -> lane broadcast matrix (BN stats)
    g*/b*  : (1, R*W*C)              BN gamma/beta pre-tiled to the lane-dense layout
    """
    f32 = jnp.float32
    nhr, rwc = x_ref.shape

    # Per-image H-boundary masks for the vertical conv taps (shared by all 3 convs).
    row = jax.lax.broadcasted_iota(jnp.int32, (nhr, rwc), 0)
    pos = row % rows_per_image
    top_edge = pos == 0                      # first row-group of each image
    bot_edge = pos == rows_per_image - 1     # last  row-group of each image

    sr = sr_ref[...]
    sb = sb_ref[...]

    def conv(a, t_ref):
        # Vertical neighbours via sublane rolls (XLU) + zero masks at per-image edges.
        up = jnp.where(top_edge, 0.0, pltpu.roll(a, 1, axis=0))        # a[rowgroup-1]
        dn = jnp.where(bot_edge, 0.0, pltpu.roll(a, nhr - 1, axis=0))  # a[rowgroup+1]
        # All 9 taps + channel contraction in a single K = 3*R*W*C MXU matmul (bf16 in,
        # f32 accumulate).
        cat = jnp.concatenate([up, a, dn], axis=-1).astype(jnp.bfloat16)
        return jnp.dot(cat, t_ref[...], preferred_element_type=f32)

    def bn(y, g_ref, b_ref):
        # Training-mode BatchNorm2d: per-channel batch mean / biased variance in f32.
        s1 = jnp.sum(y, axis=0, keepdims=True)          # (1, RWC)
        s2 = jnp.sum(y * y, axis=0, keepdims=True)      # (1, RWC)
        stats = jnp.concatenate([s1, s2], axis=0)       # (2, RWC): one MXU push, not two
        stats = jnp.dot(jnp.dot(stats, sr, preferred_element_type=f32),
                        sb, preferred_element_type=f32) * inv_count
        mean = stats[0:1]
        var = jnp.maximum(stats[1:2] - mean * mean, 0.0)
        # Folded affine: 2 VPU ops per element.
        scale = g_ref[...] * jax.lax.rsqrt(var + eps)
        shift = b_ref[...] - mean * scale
        return y * scale + shift

    def act(y):
        return jnp.where(y >= 0, y, neg_slope * y)

    x = x_ref[...].astype(f32)
    y = act(bn(conv(x, t1_ref), g1_ref, b1_ref))
    y = act(bn(conv(y, t2_ref), g2_ref, b2_ref))
    y = bn(conv(y, t3_ref), g3_ref, b3_ref)
    # Residual add (re-read x_ref to bound the live range); MaxPool2d(1) is the identity.
    y = act(y + x_ref[...].astype(f32))
    out_ref[...] = y.astype(out_ref.dtype)


# ---------- wrapper-side operator construction (weights-only, tiny) ----------

def _toeplitz_fused(w_hwio, W, R, dtype):
    """(3,3,Cin,Cout) HWIO weight -> (3*R*W*Cin, R*W*Cout) fused block-Toeplitz matrix.

    Rows are indexed by (tap-block b in {prev,cur,next} row-group, row-in-group ri,
    wi, cin); columns by (ro, wo, cout).  SAME zero padding in W and the cross-group
    H taps are baked in; per-image H edges are handled by the in-kernel masks.
    """
    Cin, Cout = w_hwio.shape[2], w_hwio.shape[3]
    b = jnp.arange(3).reshape(3, 1, 1, 1, 1)
    ri = jnp.arange(R).reshape(1, R, 1, 1, 1)
    wi = jnp.arange(W).reshape(1, 1, W, 1, 1)
    ro = jnp.arange(R).reshape(1, 1, 1, R, 1)
    wo = jnp.arange(W).reshape(1, 1, 1, 1, W)
    dh = R * (b - 1) + ri - ro + 1                       # vertical tap index
    dw = wi - wo + 1                                     # horizontal tap index
    valid = (dh >= 0) & (dh <= 2) & (dw >= 0) & (dw <= 2)
    blk = w_hwio[jnp.clip(dh, 0, 2), jnp.clip(dw, 0, 2)]   # (3,R,W,R,W,Cin,Cout)
    blk = jnp.where(valid[..., None, None], blk, 0.0)
    blk = blk.transpose(0, 1, 2, 5, 3, 4, 6)               # (b,ri,wi,Cin,ro,wo,Cout)
    return blk.reshape(3 * R * W * Cin, R * W * Cout).astype(dtype)


def _tile_lanes(v, reps):
    """(C,) -> (1, reps*C) replicated so lane k*C+c holds v[c]."""
    return jnp.tile(v.astype(jnp.float32), reps).reshape(1, -1)


# ----------------------------- public wrappers --------------------------------

def fbasic_block_nhwc(x_nhwc, params, *, eps=1e-5, neg_slope=0.1):
    """x_nhwc: (N, H, W, C) float32.  params: conv weights (HWIO) + BN gamma/beta (C,)."""
    N, H, W, C = x_nhwc.shape
    lane = W * C
    # Fold R image rows into the lane axis so the lane dim is a multiple of 128.
    R = 1
    if lane < 128 and 128 % lane == 0 and H % (128 // lane) == 0:
        R = 128 // lane
    HR = H // R            # row-groups per image
    NHR = N * HR
    RWC = R * lane

    x2d = x_nhwc.reshape(NHR, RWC)                     # contiguous, lane-dense view
    T1 = _toeplitz_fused(params["w1"], W, R, jnp.bfloat16)
    T2 = _toeplitz_fused(params["w2"], W, R, jnp.bfloat16)
    T3 = _toeplitz_fused(params["w3"], W, R, jnp.bfloat16)
    sr = jnp.tile(jnp.eye(C, dtype=jnp.float32), (R * W, 1))   # (RWC, C)  reduce
    sb = jnp.tile(jnp.eye(C, dtype=jnp.float32), (1, R * W))   # (C, RWC)  broadcast
    g1, b1 = _tile_lanes(params["g1"], R * W), _tile_lanes(params["b1"], R * W)
    g2, b2 = _tile_lanes(params["g2"], R * W), _tile_lanes(params["b2"], R * W)
    g3, b3 = _tile_lanes(params["g3"], R * W), _tile_lanes(params["b3"], R * W)

    args = (x2d, T1, T2, T3, sr, sb, g1, b1, g2, b2, g3, b3)

    kernel = functools.partial(_fbasic_kernel, rows_per_image=HR,
                               inv_count=1.0 / float(N * H * W),
                               eps=eps, neg_slope=neg_slope)

    y2d = pl.pallas_call(
        kernel,
        out_shape=jax.ShapeDtypeStruct((NHR, RWC), x_nhwc.dtype),
        in_specs=[pl.BlockSpec(a.shape, lambda *_: (0, 0)) for a in args],
        out_specs=pl.BlockSpec((NHR, RWC), lambda *_: (0, 0)),
    )(*args)

    return y2d.reshape(N, H, W, C)


def fbasic_block_nchw(x_nchw, params):
    # PyTorch-facing entry point: NCHW in, NCHW out.
    # TODO(synk): when chaining blocks, stay in the NHWC lane-dense layout and call
    #             fbasic_block_nhwc directly to avoid per-call transposes.
    x_nhwc = jnp.transpose(x_nchw, (0, 2, 3, 1))
    y = fbasic_block_nhwc(x_nhwc, params)
    return jnp.transpose(y, (0, 3, 1, 2))


# ----------------------------- pure-JAX reference ------------------------------

def _reference_nhwc(x, p, eps=1e-5, slope=0.1):
    def conv(h, w):
        return jax.lax.conv_general_dilated(
            h, w, window_strides=(1, 1), padding="SAME",
            dimension_numbers=("NHWC", "HWIO", "NHWC"))

    def bn(h, g, b):
        mean = jnp.mean(h, axis=(0, 1, 2), keepdims=True)
        var = jnp.mean((h - mean) ** 2, axis=(0, 1, 2), keepdims=True)
        return (h - mean) * jax.lax.rsqrt(var + eps) * g + b

    act = lambda h: jnp.where(h >= 0, h, slope * h)

    out = act(bn(conv(x, p["w1"]), p["g1"], p["b1"]))
    out = act(bn(conv(out, p["w2"]), p["g2"], p["b2"]))
    out = bn(conv(out, p["w3"]), p["g3"], p["b3"])
    return act(out + x)


if __name__ == "__main__":
    key = jax.random.PRNGKey(0)
    N, C, Hs, Ws = 2, 4, 16, 16     # inplanes == planes == 4 (residual add requires it)

    k_x, k1, k2, k3 = jax.random.split(key, 4)
    x_nchw = jax.random.normal(k_x, (N, C, Hs, Ws), jnp.float32)

    def init_conv(k):
        fan_in = 3 * 3 * C
        return jax.random.normal(k, (3, 3, C, C), jnp.float32) * (2.0 / fan_in) ** 0.5

    params = {
        "w1": init_conv(k1), "w2": init_conv(k2), "w3": init_conv(k3),
        # BatchNorm2d default affine init: gamma=1, beta=0
        "g1": jnp.ones((C,), jnp.float32), "b1": jnp.zeros((C,), jnp.float32),
        "g2": jnp.ones((C,), jnp.float32), "b2": jnp.zeros((C,), jnp.float32),
        "g3": jnp.ones((C,), jnp.float32), "b3": jnp.zeros((C,), jnp.float32),
    }

    out = jax.block_until_ready(fbasic_block_nchw(x_nchw, params))

    # correctness check against pure-JAX f32 reference (conv operands are bf16 in the
    # kernel, so the tolerance is loosened accordingly; stats/residual stay f32)
    x_nhwc = jnp.transpose(x_nchw, (0, 2, 3, 1))
    ref = jnp.transpose(_reference_nhwc(x_nhwc, params), (0, 3, 1, 2))
    assert out.shape == (N, C, Hs, Ws)
    err = float(jnp.max(jnp.abs(out - ref)))
    assert jnp.allclose(out, ref, atol=5e-2, rtol=5e-2), err

    print("KERNEL_OK")
</pallas_src>

<mosaic_0001>
module attributes {stable_mosaic.version = 11 : i64} {
  func.func @_fbasic_kernel(%arg0: memref<16x128xf32, #tpu.memory_space<vmem>>, %arg1: memref<384x128xbf16, #tpu.memory_space<vmem>>, %arg2: memref<384x128xbf16, #tpu.memory_space<vmem>>, %arg3: memref<384x128xbf16, #tpu.memory_space<vmem>>, %arg4: memref<128x4xf32, #tpu.memory_space<vmem>>, %arg5: memref<4x128xf32, #tpu.memory_space<vmem>>, %arg6: memref<1x128xf32, #tpu.memory_space<vmem>>, %arg7: memref<1x128xf32, #tpu.memory_space<vmem>>, %arg8: memref<1x128xf32, #tpu.memory_space<vmem>>, %arg9: memref<1x128xf32, #tpu.memory_space<vmem>>, %arg10: memref<1x128xf32, #tpu.memory_space<vmem>>, %arg11: memref<1x128xf32, #tpu.memory_space<vmem>>, %arg12: memref<16x128xf32, #tpu.memory_space<vmem>>) attributes {dimension_semantics = [], scalar_prefetch = 0 : i64, scratch_operands = 0 : i64, tpu.core_type = #tpu.core_type<tc>} {
    %0 = tpu.iota {dimensions = array<i32: 0>} : vector<16x128xi32>
    %c8_i32 = arith.constant 8 : i32
    %c0_i32 = arith.constant 0 : i32
    %1 = arith.cmpi eq, %c8_i32, %c0_i32 : i32
    %c1_i32 = arith.constant 1 : i32
    %2 = arith.select %1, %c1_i32, %c8_i32 : i32
    %3 = vector.broadcast %2 : i32 to vector<16x128xi32>
    %4 = arith.remsi %0, %3 : vector<16x128xi32>
    %c0_i32_0 = arith.constant 0 : i32
    %5 = vector.broadcast %c0_i32_0 : i32 to vector<16x128xi32>
    %6 = arith.cmpi ne, %4, %5 : vector<16x128xi32>
    %c0_i32_1 = arith.constant 0 : i32
    %7 = vector.broadcast %c0_i32_1 : i32 to vector<16x128xi32>
    %8 = arith.cmpi slt, %4, %7 : vector<16x128xi32>
    %c0_i32_2 = arith.constant 0 : i32
    %9 = arith.cmpi slt, %2, %c0_i32_2 : i32
    %10 = vector.broadcast %9 : i1 to vector<16x128xi1>
    %11 = vector.broadcast %10 : vector<16x128xi1> to vector<16x128xi1>
    %12 = arith.xori %8, %11 : vector<16x128xi1>
    %13 = arith.andi %12, %6 : vector<16x128xi1>
    %14 = vector.broadcast %2 : i32 to vector<16x128xi32>
    %15 = arith.addi %4, %14 : vector<16x128xi32>
    %16 = arith.select %13, %15, %4 : vector<16x128xi1>, vector<16x128xi32>
    %c0_i32_3 = arith.constant 0 : i32
    %17 = vector.broadcast %c0_i32_3 : i32 to vector<16x128xi32>
    %18 = arith.cmpi eq, %16, %17 : vector<16x128xi32>
    %c7_i32 = arith.constant 7 : i32
    %19 = vector.broadcast %c7_i32 : i32 to vector<16x128xi32>
    %20 = arith.cmpi eq, %16, %19 : vector<16x128xi32>
    %c0 = arith.constant 0 : index
    %c0_4 = arith.constant 0 : index
    %21 = vector.load %arg4[%c0, %c0_4] : memref<128x4xf32, #tpu.memory_space<vmem>>, vector<128x4xf32>
    %c0_5 = arith.constant 0 : index
    %c0_6 = arith.constant 0 : index
    %22 = vector.load %arg5[%c0_5, %c0_6] : memref<4x128xf32, #tpu.memory_space<vmem>>, vector<4x128xf32>
    %c0_7 = arith.constant 0 : index
    %c0_8 = arith.constant 0 : index
    %23 = vector.load %arg0[%c0_7, %c0_8] : memref<16x128xf32, #tpu.memory_space<vmem>>, vector<16x128xf32>
    %c1_i32_9 = arith.constant 1 : i32
    %24 = tpu.dynamic_rotate %23 by %c1_i32_9 dim 0 : vector<16x128xf32>, i32 -> vector<16x128xf32>
    %cst = arith.constant 0.000000e+00 : f32
    %25 = vector.broadcast %cst : f32 to vector<16x128xf32>
    %26 = arith.select %18, %25, %24 : vector<16x128xi1>, vector<16x128xf32>
    %c15_i32 = arith.constant 15 : i32
    %27 = tpu.dynamic_rotate %23 by %c15_i32 dim 0 : vector<16x128xf32>, i32 -> vector<16x128xf32>
    %cst_10 = arith.constant 0.000000e+00 : f32
    %28 = vector.broadcast %cst_10 : f32 to vector<16x128xf32>
    %29 = arith.select %20, %28, %27 : vector<16x128xi1>, vector<16x128xf32>
    %30 = tpu.concatenate %26, %23, %29 in 1 : vector<16x128xf32>, vector<16x128xf32>, vector<16x128xf32> -> vector<16x384xf32>
    %31 = arith.truncf %30 : vector<16x384xf32> to vector<16x384xbf16>
    %c0_11 = arith.constant 0 : index
    %c0_12 = arith.constant 0 : index
    %32 = vector.load %arg1[%c0_11, %c0_12] : memref<384x128xbf16, #tpu.memory_space<vmem>>, vector<384x128xbf16>
    %cst_13 = arith.constant dense<0.000000e+00> : vector<16x128xf32>
    %33 = tpu.matmul %31, %32, %cst_13 {dimension_numbers = #tpu.dot_dimension_numbers<[1], [0], [0], [1], [0, 0, 1, 1], [], []>} : vector<16x384xbf16>, vector<384x128xbf16>, vector<16x128xf32> -> vector<16x128xf32>
    %cst_14 = arith.constant dense<0.000000e+00> : vector<128xf32>
    %34 = vector.multi_reduction <add>, %33, %cst_14 [0] : vector<16x128xf32> to vector<128xf32>
    %35 = vector.shape_cast %34 : vector<128xf32> to vector<1x128xf32>
    %36 = arith.mulf %33, %33 : vector<16x128xf32>
    %cst_15 = arith.constant dense<0.000000e+00> : vector<128xf32>
    %37 = vector.multi_reduction <add>, %36, %cst_15 [0] : vector<16x128xf32> to vector<128xf32>
    %38 = vector.shape_cast %37 : vector<128xf32> to vector<1x128xf32>
    %39 = tpu.concatenate %35, %38 in 0 : vector<1x128xf32>, vector<1x128xf32> -> vector<2x128xf32>
    %cst_16 = arith.constant dense<0.000000e+00> : vector<2x4xf32>
    %40 = tpu.matmul %39, %21, %cst_16 {dimension_numbers = #tpu.dot_dimension_numbers<[1], [0], [0], [1], [0, 0, 1, 1], [], []>} : vector<2x128xf32>, vector<128x4xf32>, vector<2x4xf32> -> vector<2x4xf32>
    %cst_17 = arith.constant dense<0.000000e+00> : vector<2x128xf32>
    %41 = tpu.matmul %40, %22, %cst_17 {dimension_numbers = #tpu.dot_dimension_numbers<[1], [0], [0], [1], [0, 0, 1, 1], [], []>} : vector<2x4xf32>, vector<4x128xf32>, vector<2x128xf32> -> vector<2x128xf32>
    %cst_18 = arith.constant 0.001953125 : f32
    %42 = vector.broadcast %cst_18 : f32 to vector<2x128xf32>
    %43 = arith.mulf %41, %42 : vector<2x128xf32>
    %44 = vector.extract_strided_slice %43 {offsets = [0, 0], sizes = [1, 128], strides = [1, 1]} : vector<2x128xf32> to vector<1x128xf32>
    %45 = vector.extract_strided_slice %43 {offsets = [1, 0], sizes = [1, 128], strides = [1, 1]} : vector<2x128xf32> to vector<1x128xf32>
    %46 = arith.mulf %44, %44 : vector<1x128xf32>
    %47 = arith.subf %45, %46 : vector<1x128xf32>
    %cst_19 = arith.constant 0.000000e+00 : f32
    %48 = vector.broadcast %cst_19 : f32 to vector<1x128xf32>
    %49 = arith.maximumf %47, %48 : vector<1x128xf32>
    %c0_20 = arith.constant 0 : index
    %c0_21 = arith.constant 0 : index
    %50 = vector.load %arg6[%c0_20, %c0_21] : memref<1x128xf32, #tpu.memory_space<vmem>>, vector<1x128xf32>
    %cst_22 = arith.constant 9.99999974E-6 : f32
    %51 = vector.broadcast %cst_22 : f32 to vector<1x128xf32>
    %52 = arith.addf %49, %51 : vector<1x128xf32>
    %53 = math.rsqrt %52 : vector<1x128xf32>
    %54 = arith.mulf %50, %53 : vector<1x128xf32>
    %c0_23 = arith.constant 0 : index
    %c0_24 = arith.constant 0 : index
    %55 = vector.load %arg7[%c0_23, %c0_24] : memref<1x128xf32, #tpu.memory_space<vmem>>, vector<1x128xf32>
    %56 = arith.mulf %44, %54 : vector<1x128xf32>
    %57 = arith.subf %55, %56 : vector<1x128xf32>
    %58 = vector.broadcast %54 : vector<1x128xf32> to vector<16x128xf32>
    %59 = arith.mulf %33, %58 : vector<16x128xf32>
    %60 = vector.broadcast %57 : vector<1x128xf32> to vector<16x128xf32>
    %61 = arith.addf %59, %60 : vector<16x128xf32>
    %cst_25 = arith.constant 0.000000e+00 : f32
    %62 = vector.broadcast %cst_25 : f32 to vector<16x128xf32>
    %63 = arith.cmpf oge, %61, %62 : vector<16x128xf32>
    %cst_26 = arith.constant 1.000000e-01 : f32
    %64 = vector.broadcast %cst_26 : f32 to vector<16x128xf32>
    %65 = arith.mulf %64, %61 : vector<16x128xf32>
    %66 = arith.select %63, %61, %65 : vector<16x128xi1>, vector<16x128xf32>
    %c1_i32_27 = arith.constant 1 : i32
    %67 = tpu.dynamic_rotate %66 by %c1_i32_27 dim 0 : vector<16x128xf32>, i32 -> vector<16x128xf32>
    %cst_28 = arith.constant 0.000000e+00 : f32
    %68 = vector.broadcast %cst_28 : f32 to vector<16x128xf32>
    %69 = arith.select %18, %68, %67 : vector<16x128xi1>, vector<16x128xf32>
    %c15_i32_29 = arith.constant 15 : i32
    %70 = tpu.dynamic_rotate %66 by %c15_i32_29 dim 0 : vector<16x128xf32>, i32 -> vector<16x128xf32>
    %cst_30 = arith.constant 0.000000e+00 : f32
    %71 = vector.broadcast %cst_30 : f32 to vector<16x128xf32>
    %72 = arith.select %20, %71, %70 : vector<16x128xi1>, vector<16x128xf32>
    %73 = tpu.concatenate %69, %66, %72 in 1 : vector<16x128xf32>, vector<16x128xf32>, vector<16x128xf32> -> vector<16x384xf32>
    %74 = arith.truncf %73 : vector<16x384xf32> to vector<16x384xbf16>
    %c0_31 = arith.constant 0 : index
    %c0_32 = arith.constant 0 : index
    %75 = vector.load %arg2[%c0_31, %c0_32] : memref<384x128xbf16, #tpu.memory_space<vmem>>, vector<384x128xbf16>
    %cst_33 = arith.constant dense<0.000000e+00> : vector<16x128xf32>
    %76 = tpu.matmul %74, %75, %cst_33 {dimension_numbers = #tpu.dot_dimension_numbers<[1], [0], [0], [1], [0, 0, 1, 1], [], []>} : vector<16x384xbf16>, vector<384x128xbf16>, vector<16x128xf32> -> vector<16x128xf32>
    %cst_34 = arith.constant dense<0.000000e+00> : vector<128xf32>
    %77 = vector.multi_reduction <add>, %76, %cst_34 [0] : vector<16x128xf32> to vector<128xf32>
    %78 = vector.shape_cast %77 : vector<128xf32> to vector<1x128xf32>
    %79 = arith.mulf %76, %76 : vector<16x128xf32>
    %cst_35 = arith.constant dense<0.000000e+00> : vector<128xf32>
    %80 = vector.multi_reduction <add>, %79, %cst_35 [0] : vector<16x128xf32> to vector<128xf32>
    %81 = vector.shape_cast %80 : vector<128xf32> to vector<1x128xf32>
    %82 = tpu.concatenate %78, %81 in 0 : vector<1x128xf32>, vector<1x128xf32> -> vector<2x128xf32>
    %cst_36 = arith.constant dense<0.000000e+00> : vector<2x4xf32>
    %83 = tpu.matmul %82, %21, %cst_36 {dimension_numbers = #tpu.dot_dimension_numbers<[1], [0], [0], [1], [0, 0, 1, 1], [], []>} : vector<2x128xf32>, vector<128x4xf32>, vector<2x4xf32> -> vector<2x4xf32>
    %cst_37 = arith.constant dense<0.000000e+00> : vector<2x128xf32>
    %84 = tpu.matmul %83, %22, %cst_37 {dimension_numbers = #tpu.dot_dimension_numbers<[1], [0], [0], [1], [0, 0, 1, 1], [], []>} : vector<2x4xf32>, vector<4x128xf32>, vector<2x128xf32> -> vector<2x128xf32>
    %cst_38 = arith.constant 0.001953125 : f32
    %85 = vector.broadcast %cst_38 : f32 to vector<2x128xf32>
    %86 = arith.mulf %84, %85 : vector<2x128xf32>
    %87 = vector.extract_strided_slice %86 {offsets = [0, 0], sizes = [1, 128], strides = [1, 1]} : vector<2x128xf32> to vector<1x128xf32>
    %88 = vector.extract_strided_slice %86 {offsets = [1, 0], sizes = [1, 128], strides = [1, 1]} : vector<2x128xf32> to vector<1x128xf32>
    %89 = arith.mulf %87, %87 : vector<1x128xf32>
    %90 = arith.subf %88, %89 : vector<1x128xf32>
    %cst_39 = arith.constant 0.000000e+00 : f32
    %91 = vector.broadcast %cst_39 : f32 to vector<1x128xf32>
    %92 = arith.maximumf %90, %91 : vector<1x128xf32>
    %c0_40 = arith.constant 0 : index
    %c0_41 = arith.constant 0 : index
    %93 = vector.load %arg8[%c0_40, %c0_41] : memref<1x128xf32, #tpu.memory_space<vmem>>, vector<1x128xf32>
    %cst_42 = arith.constant 9.99999974E-6 : f32
    %94 = vector.broadcast %cst_42 : f32 to vector<1x128xf32>
    %95 = arith.addf %92, %94 : vector<1x128xf32>
    %96 = math.rsqrt %95 : vector<1x128xf32>
    %97 = arith.mulf %93, %96 : vector<1x128xf32>
    %c0_43 = arith.constant 0 : index
    %c0_44 = arith.constant 0 : index
    %98 = vector.load %arg9[%c0_43, %c0_44] : memref<1x128xf32, #tpu.memory_space<vmem>>, vector<1x128xf32>
    %99 = arith.mulf %87, %97 : vector<1x128xf32>
    %100 = arith.subf %98, %99 : vector<1x128xf32>
    %101 = vector.broadcast %97 : vector<1x128xf32> to vector<16x128xf32>
    %102 = arith.mulf %76, %101 : vector<16x128xf32>
    %103 = vector.broadcast %100 : vector<1x128xf32> to vector<16x128xf32>
    %104 = arith.addf %102, %103 : vector<16x128xf32>
    %cst_45 = arith.constant 0.000000e+00 : f32
    %105 = vector.broadcast %cst_45 : f32 to vector<16x128xf32>
    %106 = arith.cmpf oge, %104, %105 : vector<16x128xf32>
    %cst_46 = arith.constant 1.000000e-01 : f32
    %107 = vector.broadcast %cst_46 : f32 to vector<16x128xf32>
    %108 = arith.mulf %107, %104 : vector<16x128xf32>
    %109 = arith.select %106, %104, %108 : vector<16x128xi1>, vector<16x128xf32>
    %c1_i32_47 = arith.constant 1 : i32
    %110 = tpu.dynamic_rotate %109 by %c1_i32_47 dim 0 : vector<16x128xf32>, i32 -> vector<16x128xf32>
    %cst_48 = arith.constant 0.000000e+00 : f32
    %111 = vector.broadcast %cst_48 : f32 to vector<16x128xf32>
    %112 = arith.select %18, %111, %110 : vector<16x128xi1>, vector<16x128xf32>
    %c15_i32_49 = arith.constant 15 : i32
    %113 = tpu.dynamic_rotate %109 by %c15_i32_49 dim 0 : vector<16x128xf32>, i32 -> vector<16x128xf32>
    %cst_50 = arith.constant 0.000000e+00 : f32
    %114 = vector.broadcast %cst_50 : f32 to vector<16x128xf32>
    %115 = arith.select %20, %114, %113 : vector<16x128xi1>, vector<16x128xf32>
    %116 = tpu.concatenate %112, %109, %115 in 1 : vector<16x128xf32>, vector<16x128xf32>, vector<16x128xf32> -> vector<16x384xf32>
    %117 = arith.truncf %116 : vector<16x384xf32> to vector<16x384xbf16>
    %c0_51 = arith.constant 0 : index
    %c0_52 = arith.constant 0 : index
    %118 = vector.load %arg3[%c0_51, %c0_52] : memref<384x128xbf16, #tpu.memory_space<vmem>>, vector<384x128xbf16>
    %cst_53 = arith.constant dense<0.000000e+00> : vector<16x128xf32>
    %119 = tpu.matmul %117, %118, %cst_53 {dimension_numbers = #tpu.dot_dimension_numbers<[1], [0], [0], [1], [0, 0, 1, 1], [], []>} : vector<16x384xbf16>, vector<384x128xbf16>, vector<16x128xf32> -> vector<16x128xf32>
    %cst_54 = arith.constant dense<0.000000e+00> : vector<128xf32>
    %120 = vector.multi_reduction <add>, %119, %cst_54 [0] : vector<16x128xf32> to vector<128xf32>
    %121 = vector.shape_cast %120 : vector<128xf32> to vector<1x128xf32>
    %122 = arith.mulf %119, %119 : vector<16x128xf32>
    %cst_55 = arith.constant dense<0.000000e+00> : vector<128xf32>
    %123 = vector.multi_reduction <add>, %122, %cst_55 [0] : vector<16x128xf32> to vector<128xf32>
    %124 = vector.shape_cast %123 : vector<128xf32> to vector<1x128xf32>
    %125 = tpu.concatenate %121, %124 in 0 : vector<1x128xf32>, vector<1x128xf32> -> vector<2x128xf32>
    %cst_56 = arith.constant dense<0.000000e+00> : vector<2x4xf32>
    %126 = tpu.matmul %125, %21, %cst_56 {dimension_numbers = #tpu.dot_dimension_numbers<[1], [0], [0], [1], [0, 0, 1, 1], [], []>} : vector<2x128xf32>, vector<128x4xf32>, vector<2x4xf32> -> vector<2x4xf32>
    %cst_57 = arith.constant dense<0.000000e+00> : vector<2x128xf32>
    %127 = tpu.matmul %126, %22, %cst_57 {dimension_numbers = #tpu.dot_dimension_numbers<[1], [0], [0], [1], [0, 0, 1, 1], [], []>} : vector<2x4xf32>, vector<4x128xf32>, vector<2x128xf32> -> vector<2x128xf32>
    %cst_58 = arith.constant 0.001953125 : f32
    %128 = vector.broadcast %cst_58 : f32 to vector<2x128xf32>
    %129 = arith.mulf %127, %128 : vector<2x128xf32>
    %130 = vector.extract_strided_slice %129 {offsets = [0, 0], sizes = [1, 128], strides = [1, 1]} : vector<2x128xf32> to vector<1x128xf32>
    %131 = vector.extract_strided_slice %129 {offsets = [1, 0], sizes = [1, 128], strides = [1, 1]} : vector<2x128xf32> to vector<1x128xf32>
    %132 = arith.mulf %130, %130 : vector<1x128xf32>
    %133 = arith.subf %131, %132 : vector<1x128xf32>
    %cst_59 = arith.constant 0.000000e+00 : f32
    %134 = vector.broadcast %cst_59 : f32 to vector<1x128xf32>
    %135 = arith.maximumf %133, %134 : vector<1x128xf32>
    %c0_60 = arith.constant 0 : index
    %c0_61 = arith.constant 0 : index
    %136 = vector.load %arg10[%c0_60, %c0_61] : memref<1x128xf32, #tpu.memory_space<vmem>>, vector<1x128xf32>
    %cst_62 = arith.constant 9.99999974E-6 : f32
    %137 = vector.broadcast %cst_62 : f32 to vector<1x128xf32>
    %138 = arith.addf %135, %137 : vector<1x128xf32>
    %139 = math.rsqrt %138 : vector<1x128xf32>
    %140 = arith.mulf %136, %139 : vector<1x128xf32>
    %c0_63 = arith.constant 0 : index
    %c0_64 = arith.constant 0 : index
    %141 = vector.load %arg11[%c0_63, %c0_64] : memref<1x128xf32, #tpu.memory_space<vmem>>, vector<1x128xf32>
    %142 = arith.mulf %130, %140 : vector<1x128xf32>
    %143 = arith.subf %141, %142 : vector<1x128xf32>
    %144 = vector.broadcast %140 : vector<1x128xf32> to vector<16x128xf32>
    %145 = arith.mulf %119, %144 : vector<16x128xf32>
    %146 = vector.broadcast %143 : vector<1x128xf32> to vector<16x128xf32>
    %147 = arith.addf %145, %146 : vector<16x128xf32>
    %c0_65 = arith.constant 0 : index
    %c0_66 = arith.constant 0 : index
    %148 = vector.load %arg0[%c0_65, %c0_66] : memref<16x128xf32, #tpu.memory_space<vmem>>, vector<16x128xf32>
    %149 = arith.addf %147, %148 : vector<16x128xf32>
    %cst_67 = arith.constant 0.000000e+00 : f32
    %150 = vector.broadcast %cst_67 : f32 to vector<16x128xf32>
    %151 = arith.cmpf oge, %149, %150 : vector<16x128xf32>
    %cst_68 = arith.constant 1.000000e-01 : f32
    %152 = vector.broadcast %cst_68 : f32 to vector<16x128xf32>
    %153 = arith.mulf %152, %149 : vector<16x128xf32>
    %154 = arith.select %151, %149, %153 : vector<16x128xi1>, vector<16x128xf32>
    %c0_69 = arith.constant 0 : index
    %c0_70 = arith.constant 0 : index
    %155 = vector.load %arg12[%c0_69, %c0_70] : memref<16x128xf32, #tpu.memory_space<vmem>>, vector<16x128xf32>
    tpu.vector_store %arg12[%c0_69, %c0_70], %154 {strides = array<i32>} : memref<16x128xf32, #tpu.memory_space<vmem>>, vector<16x128xf32>,
    return
  }
}

</mosaic_0001>

<bundles_post_ra>
// kernel: tpu_custom_call.1
= control target key start
LH: loop header
LB: loop body
LE: loop exit
PB: predicated region body
PF: predicated region fallthrough
CT: control target
= control target key end

     0   :  { %17 = vsyncpa [#allocation3], 0  ;;  %s2825_s0 = inlined_call_operand.vmem [shape: f32[16,128], index: 0, kind: input, shape index: {}]   ;;  %s2826_s1 = inlined_call_operand.hbm [shape: bf16[384,128], index: 1, kind: input, shape index: {}]   ;;  %s2827_s2 = inlined_call_operand.hbm [shape: bf16[384,128], index: 2, kind: input, shape index: {}]   ;;  %s2828_s3 = inlined_call_operand.hbm [shape: bf16[384,128], index: 3, kind: input, shape index: {}]   ;;  %s2829_s4 = inlined_call_operand.vmem [shape: f32[128,4], index: 4, kind: input, shape index: {}]   ;;  %s2830_s5 = inlined_call_operand.vmem [shape: f32[4,128], index: 5, kind: input, shape index: {}]   ;;  %s2831_s6 = inlined_call_operand.vmem [shape: f32[1,128], index: 6, kind: input, shape index: {}]   ;;  %s2832_s7 = inlined_call_operand.vmem [shape: f32[1,128], index: 7, kind: input, shape index: {}]   ;;  %s2833_s8 = inlined_call_operand.vmem [shape: f32[1,128], index: 8, kind: input, shape index: {}]   ;;  %s2834_s9 = inlined_call_operand.vmem [shape: f32[1,128], index: 9, kind: input, shape index: {}]   ;;  %s2835_s10 = inlined_call_operand.vmem [shape: f32[1,128], index: 10, kind: input, shape index: {}]   ;;  %s2836_s11 = inlined_call_operand.vmem [shape: f32[1,128], index: 11, kind: input, shape index: {}]   ;;  %s2837_s12 = inlined_call_operand.hbm [shape: f32[16,128], index: 12, kind: output, shape index: {}]  }
   0x1   :  { %18 = vsyncpa [#allocation6], 0 }
   0x2   :  { %19 = vsyncpa [#allocation4], 0  ;;  %s2370_s21 = smov [#allocation5]   ;;  %s2371_s23 = smov [#allocation2]  }
   0x3   :  { %s39_s22 = sshll.u32 %s2370_s21, 4  ;;  %s27_s24 = sshll.u32 %s2371_s23, 4  ;;  %s40_s22 = int_to_ptr.vmem [resolvable:$true] %s39_s22  ;;  %s2447_s24 = int_to_ptr.vmem [resolvable:$true] %s27_s24 }
   0x4   :  { %s2276_s27 = scalar_lea.hbm %s2827_s2, 3072 }
   0x5   :  { %p2277_p0 = scmp.ne.s32.totalorder %s2827_s2, %s2276_s27  ;;  %p2280_p1 = scmp.lt.u32.totalorder %s2276_s27, %s2827_s2 }
   0x7   :  { %p2282_p2 = pnand %p2280_p1, %p2277_p0 }
   0x9   :  { %2285 = shalt.err (!%p2282_p2)
}
   0xa   :  { %s2286_s14 = scalar_lea.vmem %s40_s22, 3072  ;;  %p2291_p4 = scmp.lt.s32.totalorder %s40_s22, %s40_s22 }
   0xb   :  { %p2287_p3 = scmp.ne.s32.totalorder %s40_s22, %s2286_s14  ;;  %p2292_p5 = scmp.lt.s32.totalorder %s2286_s14, %s2286_s14 }
   0xd   :  { %p2293_p6 = por %p2292_p5, %p2291_p4 }
   0xf   :  { %p2294_p7 = pnand %p2293_p6, %p2287_p3 }
  0x11   :  { %2297 = shalt.err (!%p2294_p7)
}
  0x12   :  { %s2372_s15 = smov 64   ;;  %s2373_s16 = smov 4  }
  0x13   :  { %45 = dma.hbm_to_vmem [thread:$0]  %s2827_s2, 3072, %s40_s22, [#allocation6], %s2372_s15, %s2372_s15, %s2373_s16  }
  0x14   :  { %s2298_s21 = scalar_lea.hbm %s2826_s1, 3072 }
  0x15   :  { %p2299_p8 = scmp.ne.s32.totalorder %s2826_s1, %s2298_s21  ;;  %p2302_p9 = scmp.lt.u32.totalorder %s2298_s21, %s2826_s1 }
  0x17   :  { %p2304_p10 = pnand %p2302_p9, %p2299_p8 }
  0x19   :  { %2307 = shalt.err (!%p2304_p10)
}
  0x1a   :  { %s2308_s28 = scalar_lea.vmem %s2447_s24, 3072  ;;  %p2313_p12 = scmp.lt.s32.totalorder %s2447_s24, %s2447_s24 }
  0x1b   :  { %p2309_p11 = scmp.ne.s32.totalorder %s2447_s24, %s2308_s28  ;;  %p2314_p13 = scmp.lt.s32.totalorder %s2308_s28, %s2308_s28 }
  0x1d   :  { %p2315_p0 = por %p2314_p13, %p2313_p12 }
  0x1f   :  { %p2316_p1 = pnand %p2315_p0, %p2309_p11 }
  0x21   :  { %2319 = shalt.err (!%p2316_p1)
}
  0x22   :  { %33 = dma.hbm_to_vmem [thread:$0]  %s2826_s1, 3072, %s2447_s24, [#allocation3], %s2372_s15, %s2372_s15, %s2373_s16  }
  0x23   :  { %s2374_s29 = smov [#allocation7]   ;;  %s2320_s17 = scalar_lea.hbm %s2828_s3, 3072 }
  0x24   :  { %s51_s30 = sshll.u32 %s2374_s29, 4  ;;  %p2321_p2 = scmp.ne.s32.totalorder %s2828_s3, %s2320_s17  ;;  %s52_s30 = int_to_ptr.vmem [resolvable:$true] %s51_s30 }
  0x25   :  { %p2324_p3 = scmp.lt.u32.totalorder %s2320_s17, %s2828_s3 }
  0x27   :  { %p2326_p4 = pnand %p2324_p3, %p2321_p2 }
  0x29   :  { %2329 = shalt.err (!%p2326_p4)
}
  0x2a   :  { %s2330_s23 = scalar_lea.vmem %s52_s30, 3072  ;;  %p2335_p6 = scmp.lt.s32.totalorder %s52_s30, %s52_s30 }
  0x2b   :  { %p2331_p5 = scmp.ne.s32.totalorder %s52_s30, %s2330_s23  ;;  %p2336_p7 = scmp.lt.s32.totalorder %s2330_s23, %s2330_s23 }
  0x2d   :  { %p2337_p8 = por %p2336_p7, %p2335_p6 }
  0x2f   :  { %p2338_p9 = pnand %p2337_p8, %p2331_p5 }
  0x31   :  { %2341 = shalt.err (!%p2338_p9)
}
  0x32   :  { %57 = dma.hbm_to_vmem [thread:$0]  %s2828_s3, 3072, %s52_s30, [#allocation6], %s2372_s15, %s2372_s15, %s2373_s16  }
  0x33   :  { %2364 = dma.done.wait [#allocation3], 3072  }
  0x34   :  { %2365 = vsyncadd [#allocation3], 4294964224 }
  0x35   :  { %2366 = dma.done.wait [#allocation6], 6144  }
  0x36   :  { %2367 = vsyncadd [#allocation6], 4294961152  ;;  %v2375_v0 = vmov 0.0   ;;  %vm2376_vm0 = vmmov 0   ;;  %v2196_v1 = vld [vmem:[#allocation2 + $0x40] sm:$0xff]   ;;  %v2199_v4 = vld [vmem:[#allocation2 + $0x48] sm:$0xff]   ;;  %v84_v7 = vlaneseq }
  0x37   :  { %1932 = vmatprep.subr.bf16.mxu1 %v2375_v0  ;;  %1948 = vmatprep.mubr.msk.bf16.mxu1 %vm2376_vm0, %v2375_v0  ;;  %v2197_v2 = vld [vmem:[#allocation2] sm:$0xff]   ;;  %v2200_v5 = vld [vmem:[#allocation2 + $0x8] sm:$0xff]   ;;  %v2202_v8 = vld [vmem:[#allocation2 + $0x50] sm:$0xff]   ;;  %v2377_v53 = vmov 0.0|0.0   ;;  %vm517_vm9 = vcmask 1043456   ;;  %vm441_vm10 = vcmask 1040384  }
  0x38   :  { %1782 = vmatprep.subr.bf16.mxu0 %v2196_v1  ;;  %v2198_v3 = vld [vmem:[#allocation2 + $0x80] sm:$0xff]   ;;  %v2201_v6 = vld [vmem:[#allocation2 + $0x88] sm:$0xff]   ;;  %v2203_v9 = vld [vmem:[#allocation2 + $0x10] sm:$0xff]   ;;  %v2504_v12 = vshrl.u32 %v84_v7, 7  ;;  %vm513_vm11 = vcmask 31744  }
  0x39   :  { %1783 = vmatpush3.bf16.msra.mxu0 %v2197_v2  ;;  %1933 = vmatpush3.bf16.msra.mxu1 %v2198_v3  ;;  %v2204_v10 = vld [vmem:[#allocation2 + $0x90] sm:$0xff]   ;;  %v2205_v11 = vld [vmem:[#allocation2 + $0x58] sm:$0xff]   ;;  %v2208_v15 = vld [vmem:[#allocation2 + $0x60] sm:$0xff]  }
  0x3a   :  { %1784 = vmatprep.subr.bf16.mxu0 %v2199_v4  ;;  %1934 = vmatprep.subr.bf16.mxu1 %v2375_v0  ;;  %v2206_v13 = vld [vmem:[#allocation2 + $0x18] sm:$0xff]   ;;  %v86_v16 = vadd.s32 8, %v2504_v12  ;;  %v2209_v17 = vld [vmem:[#allocation2 + $0x20] sm:$0xff]   ;;  %v91_v19 = vand.u32 7, %v2504_v12  ;;  %v2211_v20 = vld [vmem:[#allocation2 + $0x68] sm:$0xff]   ;;  %vm136_vm5 = vcmp.lt.s32.totalorder %v2504_v12, 1 }
  0x3b   :  { %v2207_v14 = vld [vmem:[#allocation2 + $0x98] sm:$0xff]   ;;  %v2210_v18 = vld [vmem:[#allocation2 + $0xa0] sm:$0xff]   ;;  %v2212_v22 = vld [vmem:[#allocation2 + $0x28] sm:$0xff]   ;;  %vm143_vm7 = vcmp.lt.s32.totalorder %v2504_v12, 7 }
  0x3c   :  { %v98_v21 = vand.u32 7, %v86_v16  ;;  %v2213_v23 = vld [vmem:[#allocation2 + $0xa8] sm:$0xff]   ;;  %vm2510_vm1 = vcmp.ne.s32.totalorder %v91_v19, 0  ;;  %v2214_v25 = vld [vmem:[#allocation2 + $0x70] sm:$0xff]   ;;  %vm2514_vm2 = vcmp.ne.s32.totalorder %v91_v19, 7  ;;  %v2217_v30 = vld [vmem:[#allocation2 + $0x78] sm:$0xff]  }
  0x3d   :  { %1785 = vmatpush3.bf16.msra.mxu0 %v2200_v5  ;;  %1935 = vmatpush3.bf16.msra.mxu1 %v2201_v6  ;;  %v2215_v27 = vld [vmem:[#allocation2 + $0x30] sm:$0xff]   ;;  %v132_v31 = vld [vmem:[%s2825_s0] sm:$0xff]  ;;  %v133_v32 = vld [vmem:[%s2825_s0 + $0x8] sm:$0xff] }
  0x3e   :  { %1786 = vmatprep.subr.bf16.mxu0 %v2202_v8  ;;  %1936 = vmatprep.subr.bf16.mxu1 %v2375_v0  ;;  %vm1778_vm3 = vcmp.ne.s32.totalorder %v98_v21, 0  ;;  %v2216_v28 = vld [vmem:[#allocation2 + $0xb0] sm:$0xff]   ;;  %vm2519_vm4 = vcmp.ne.s32.totalorder %v98_v21, 7  ;;  %v2218_v34 = vld [vmem:[#allocation2 + $0x38] sm:$0xff]   ;;  %v134_v35 = vrot.slane %v132_v31, 7  ;;  %v135_v36 = vrot.slane %v133_v32, 7 }
  0x3f   :  { %vm2532_vm6 = vmpackc.low %vm1778_vm3, %vm2510_vm1  ;;  %v141_v37 = vrot.slane %v132_v31, 1  ;;  %v142_v38 = vrot.slane %v133_v32, 1  ;;  %v2219_v40 = vld [vmem:[#allocation2 + $0xb8] sm:$0xff]   ;;  %v149_v41 = vpack.c.bf16 %v133_v32, %v132_v31  ;;  %v115_v42 = vld [vmem:[%s2829_s4] sm:$0xff] }
  0x40   :  { %vm2542_vm8 = vmpackc.low %vm2519_vm4, %vm2514_vm2  ;;  %v116_v43 = vld [vmem:[%s2829_s4 + $0x8] sm:$0xff]  ;;  %v137_v44 = vsel %vm136_vm5, %v134_v35, %v135_v36  ;;  %v138_v45 = vsel %vm136_vm5, %v135_v36, %v134_v35  ;;  %v117_v49 = vld [vmem:[%s2829_s4 + $0x10] sm:$0xff] }
  0x41   :  { %1787 = vmatpush3.bf16.msra.mxu0 %v2203_v9  ;;  %1937 = vmatpush3.bf16.msra.mxu1 %v2204_v10  ;;  %v144_v46 = vsel %vm143_vm7, %v141_v37, %v142_v38  ;;  %v145_v47 = vsel %vm143_vm7, %v142_v38, %v141_v37  ;;  %v1697_v48 = vpack.c.bf16 %v137_v44, %v138_v45  ;;  %v118_v50 = vld [vmem:[%s2829_s4 + $0x18] sm:$0xff]  ;;  %v119_v55 = vld [vmem:[%s2829_s4 + $0x20] sm:$0xff]  ;;  %v120_v56 = vld [vmem:[%s2829_s4 + $0x28] sm:$0xff] }
  0x42   :  { %1788 = vmatprep.subr.bf16.mxu0 %v2205_v11  ;;  %1938 = vmatprep.subr.bf16.mxu1 %v2375_v0  ;;  %v1702_v51 = vpack.c.bf16 %v145_v47, %v144_v46  ;;  %v2567_v52 = vpack.c.bf16 %v116_v43, %v115_v42  ;;  %v2576_v54 = vpack.c.bf16 %v118_v50, %v117_v49  ;;  %v121_v58 = vld [vmem:[%s2829_s4 + $0x30] sm:$0xff]  ;;  %v122_v59 = vld [vmem:[%s2829_s4 + $0x38] sm:$0xff]  ;;  %v123_v61 = vld [vmem:[%s2829_s4 + $0x40] sm:$0xff] }
  0x43   :  { %375 = vmatprep.mubr.bf16.mxu0 %v149_v41  ;;  %v2591_v57 = vpack.c.bf16 %v120_v56, %v119_v55  ;;  %v2601_v60 = vpack.c.bf16 %v122_v59, %v121_v58  ;;  %v124_v62 = vld [vmem:[%s2829_s4 + $0x48] sm:$0xff]  ;;  %v125_v1 = vld [vmem:[%s2829_s4 + $0x50] sm:$0xff]  ;;  %v126_v2 = vld [vmem:[%s2829_s4 + $0x58] sm:$0xff] }
  0x44   :  { %v2611_v63 = vpack.c.bf16 %v124_v62, %v123_v61  ;;  %v2621_v3 = vpack.c.bf16 %v126_v2, %v125_v1  ;;  %v127_v4 = vld [vmem:[%s2829_s4 + $0x60] sm:$0xff]  ;;  %v128_v5 = vld [vmem:[%s2829_s4 + $0x68] sm:$0xff]  ;;  %v129_v7 = vld [vmem:[%s2829_s4 + $0x70] sm:$0xff] }
  0x45   :  { %1789 = vmatpush3.bf16.msra.mxu0 %v2206_v13  ;;  %1939 = vmatpush3.bf16.msra.mxu1 %v2207_v14  ;;  %v2630_v6 = vpack.c.bf16 %v128_v5, %v127_v4  ;;  %v130_v8 = vld [vmem:[%s2829_s4 + $0x78] sm:$0xff]  ;;  %v2648_v10 = vld [vmem:[%s2830_s5] sm:$0xf]  ;;  %v2224_v49 = vld [vmem:[#allocation5 + $0x8] sm:$0xff]  }
  0x46   :  { %1790 = vmatprep.subr.bf16.mxu0 %v2208_v15  ;;  %1940 = vmatprep.subr.bf16.mxu1 %v2375_v0  ;;  %v2640_v9 = vpack.c.bf16 %v130_v8, %v129_v7  ;;  %v2220_v45 = vld [vmem:[#allocation5 + $0x40] sm:$0xff]   ;;  %v2225_v50 = vld [vmem:[#allocation5 + $0x88] sm:$0xff]   ;;  %v2227_v55 = vld [vmem:[#allocation5 + $0x10] sm:$0xff]  }
  0x47   :  { %v2221_v46 = vld [vmem:[#allocation5] sm:$0xff]   ;;  %v2228_v56 = vld [vmem:[#allocation5 + $0x90] sm:$0xff]   ;;  %v2229_v58 = vld [vmem:[#allocation5 + $0x58] sm:$0xff]  }
  0x48   :  { %v2222_v47 = vld [vmem:[#allocation5 + $0x80] sm:$0xff]   ;;  %v2230_v59 = vld [vmem:[#allocation5 + $0x18] sm:$0xff]   ;;  %v2235_v4 = vld [vmem:[#allocation5 + $0x68] sm:$0xff]  }
  0x49   :  { %1791 = vmatpush3.bf16.msra.mxu0 %v2209_v17  ;;  %1941 = vmatpush3.bf16.msra.mxu1 %v2210_v18  ;;  %v2231_v61 = vld [vmem:[#allocation5 + $0x98] sm:$0xff]   ;;  %v2232_v62 = vld [vmem:[#allocation5 + $0x60] sm:$0xff]   ;;  %v2236_v5 = vld [vmem:[#allocation5 + $0x28] sm:$0xff]  }
  0x4a   :  { %1792 = vmatprep.subr.bf16.mxu0 %v2211_v20  ;;  %1942 = vmatprep.subr.bf16.mxu1 %v2375_v0  ;;  %v2233_v1 = vld [vmem:[#allocation5 + $0x20] sm:$0xff]   ;;  %v2237_v7 = vld [vmem:[#allocation5 + $0xa8] sm:$0xff]   ;;  %v2238_v8 = vld [vmem:[#allocation5 + $0x70] sm:$0xff]  }
  0x4b   :  { %v2234_v2 = vld [vmem:[#allocation5 + $0xa0] sm:$0xff]  }
  0x4d   :  { %1793 = vmatpush3.bf16.msra.mxu0 %v2212_v22  ;;  %1943 = vmatpush3.bf16.msra.mxu1 %v2213_v23 }
  0x4e   :  { %1794 = vmatprep.subr.bf16.mxu0 %v2214_v25  ;;  %1944 = vmatprep.subr.bf16.mxu1 %v2375_v0 }
  0x51   :  { %1795 = vmatpush3.bf16.msra.mxu0 %v2215_v27  ;;  %1945 = vmatpush3.bf16.msra.mxu1 %v2216_v28 }
  0x52   :  { %1796 = vmatprep.subr.bf16.mxu0 %v2217_v30  ;;  %1946 = vmatprep.subr.bf16.mxu1 %v2375_v0 }
  0x55   :  { %1797 = vmatpush3.bf16.msra.mxu0 %v2218_v34  ;;  %1947 = vmatpush3.bf16.msra.mxu1 %v2219_v40 }
  0x56   :  { %2112 = vmatprep.subr.bf16.mxu0 %v2377_v53  ;;  %1987 = vmatprep.subr.mxu1 %v2375_v0 }
  0x58   :  { %1698 = vmatmul.mubr.msk.bf16.vlgmr.msra.gmra.mrb[0].mxu0 %vm2532_vm6, %v1697_v48  ;;  %1949 = vmatmul.mubr.msk.bf16.vlgmr.msra.gmra.mrb[0].mxu1 %vm2542_vm8, %v1702_v51  ;;  %v2223_v48 = vld [vmem:[#allocation5 + $0x48] sm:$0xff]   ;;  %v2226_v51 = vld [vmem:[#allocation5 + $0x50] sm:$0xff]  }
  0x59   :  { %2114 = vmatpush3.bf16.msra.mxu0 %v2567_v52  ;;  %1984 = vmatprep.mubr.msk.f32.mxu0 %vm2376_vm0, %v2375_v0 }
  0x5a   :  { %2115 = vmatprep.subr.bf16.mxu0 %v2377_v53  ;;  %1989 = vmatprep.mubr.msk.f32.mxu1 %vm2376_vm0, %v2375_v0 }
  0x5b   :  { %1988 = vmatpush3.msk.msra.mxu1 %vm517_vm9, %v2648_v10 }
  0x5c   :  { %1832 = vmatprep.subr.bf16.mxu1 %v2220_v45 }
  0x5d   :  { %2117 = vmatpush3.bf16.msra.mxu0 %v2576_v54 }
  0x5e   :  { %2118 = vmatprep.subr.bf16.mxu0 %v2377_v53 }
  0x61   :  { %2120 = vmatpush3.bf16.msra.mxu0 %v2591_v57 }
  0x62   :  { %2121 = vmatprep.subr.bf16.mxu0 %v2377_v53 }
  0x65   :  { %2123 = vmatpush3.bf16.msra.mxu0 %v2601_v60 }
  0x66   :  { %2124 = vmatprep.subr.bf16.mxu0 %v2377_v53 }
  0x69   :  { %2126 = vmatpush3.bf16.msra.mxu0 %v2611_v63 }
  0x6a   :  { %2127 = vmatprep.subr.bf16.mxu0 %v2377_v53 }
  0x6d   :  { %2129 = vmatpush3.bf16.msra.mxu0 %v2621_v3 }
  0x6e   :  { %2130 = vmatprep.subr.bf16.mxu0 %v2377_v53 }
  0x71   :  { %2132 = vmatpush3.bf16.msra.mxu0 %v2630_v6 }
  0x72   :  { %2133 = vmatprep.subr.bf16.mxu0 %v2377_v53 }
  0x75   :  { %2135 = vmatpush3.bf16.msra.mxu0 %v2640_v9 }
  0x76   :  { %1992 = vmatprep.subr.bf16.mxu0 %v2375_v0 }
 0x12b   :  { %v1798_v11 = vpop.f32.mrb[0].mxu0  ;;  %v418_v13 = vpop.f32.mrb[0].mxu1 }
 0x12c   :  { %v1799_v14 = vpop.f32.mrb[1].mxu0  ;;  %v1950_v16 = vpop.f32.mrb[1].mxu1 }
 0x12d   :  { %v1800_v15 = vadd.f32 %v1799_v14, %v1798_v11  ;;  %v1801_v17 = vpop.f32.mrb[2].mxu0  ;;  %v421_v18 = vpop.f32.mrb[2].mxu1  ;;  %v2239_v11 = vld [vmem:[#allocation5 + $0x30] sm:$0xff]   ;;  %v2241_v14 = vld [vmem:[#allocation5 + $0x78] sm:$0xff]  }
 0x12e   :  { %v1802_v19 = vpop.f32.mrb[3].mxu0  ;;  %v1951_v22 = vpop.f32.mrb[3].mxu1  ;;  %v2243_v16 = vld [vmem:[#allocation5 + $0xb8] sm:$0xff]  }
 0x12f   :  { %v2652_v20 = vadd.f32 %v1800_v15, %v418_v13  ;;  %v1803_v21 = vadd.f32 %v1802_v19, %v1801_v17  ;;  %v2240_v13 = vld [vmem:[#allocation5 + $0xb0] sm:$0xff]   ;;  %v2242_v15 = vld [vmem:[#allocation5 + $0x38] sm:$0xff]  }
 0x131   :  { %v2654_v23 = vadd.f32 %v1803_v21, %v421_v18  ;;  %v432_v24 = vmul.f32 %v2652_v20, %v2652_v20 }
 0x133   :  { %v425_v25 = vadd.f32 %v2654_v23, %v2652_v20  ;;  %v433_v26 = vmul.f32 %v2654_v23, %v2654_v23 }
 0x135   :  { %v426_v27 = vrot.slane %v425_v25, 4  ;;  %v434_v28 = vadd.f32 %v433_v26, %v432_v24 }
 0x137   :  { %v427_v29 = vadd.f32 %v426_v27, %v425_v25  ;;  %v435_v30 = vrot.slane %v434_v28, 4  ;;  %v2378_v27 = vmov 1966171168  }
 0x139   :  { %v428_v31 = vrot.slane %v427_v29, 2  ;;  %v436_v32 = vadd.f32 %v435_v30, %v434_v28  ;;  %v603_v28 = vunpack.c.l.s4 %v2378_v27 }
 0x13b   :  { %v429_v34 = vadd.f32 %v428_v31, %v427_v29  ;;  %v437_v35 = vrot.slane %v436_v32, 2  ;;  %v604_v29 = vunpack.c.0.s8 %v603_v28 }
 0x13d   :  { %v430_v36 = vrot.slane %v429_v34, 1  ;;  %v438_v37 = vadd.f32 %v437_v35, %v436_v32  ;;  %v2675_v30 = vsub.s32 %v604_v29, %v2504_v12  ;;  %v598_v35 = vld [vmem:[%s2831_s6] sm:$0x1] }
 0x13f   :  { %v439_v38 = vrot.slane %v438_v37, 1  ;;  %v431_v40 = vadd.f32 %v430_v36, %v429_v34 }
 0x141   :  { %v440_v41 = vadd.f32 %v439_v38, %v438_v37  ;;  %v2683_v37 = vsub.s32 0, %v2504_v12 }
 0x143   :  { %v442_v42 = vsel %vm441_vm10, %v431_v40, %v440_v41  ;;  %v619_v40 = vld [vmem:[%s2832_s7] sm:$0x1] }
 0x144   :  { %1985 = vmatmul.mubr.f32.vlgmr.msra.gmra.mrb[4].mxu0 %v442_v42 }
 0x145   :  { %2008 = vmatprep.mubr.msk.bf16.mxu0 %vm2376_vm0, %v2375_v0  ;;  %1993 = vmatpush3.bf16.msra.mxu0 %v2222_v47 }
 0x146   :  { %1994 = vmatprep.subr.bf16.mxu0 %v2375_v0 }
 0x149   :  { %1995 = vmatpush3.bf16.msra.mxu0 %v2225_v50 }
 0x14a   :  { %1996 = vmatprep.subr.bf16.mxu0 %v2375_v0 }
 0x14d   :  { %1997 = vmatpush3.bf16.msra.mxu0 %v2228_v56 }
 0x14e   :  { %1998 = vmatprep.subr.bf16.mxu0 %v2375_v0 }
 0x151   :  { %1999 = vmatpush3.bf16.msra.mxu0 %v2231_v61 }
 0x152   :  { %2000 = vmatprep.subr.bf16.mxu0 %v2375_v0 }
 0x155   :  { %2001 = vmatpush3.bf16.msra.mxu0 %v2234_v2 }
 0x156   :  { %2002 = vmatprep.subr.bf16.mxu0 %v2375_v0 }
 0x159   :  { %2003 = vmatpush3.bf16.msra.mxu0 %v2237_v7 }
 0x15a   :  { %2004 = vmatprep.subr.bf16.mxu0 %v2375_v0 }
 0x15d   :  { %2005 = vmatpush3.bf16.msra.mxu0 %v2240_v13 }
 0x15e   :  { %2006 = vmatprep.subr.bf16.mxu0 %v2375_v0 }
 0x161   :  { %2007 = vmatpush3.bf16.msra.mxu0 %v2243_v16 }
 0x217   :  { %v509_v43 = vpop.f32.mrb[4].mxu0 }
 0x218   :  { %v1986_v44 = vpop.f32.mrb[5].mxu0  ;;  %1990 = vmatmul.mubr.msk.f32.vlgmr.msra.gmra.mrb[4].mxu1 %vm513_vm11, %v509_v43 }
 0x219   :  { %1833 = vmatpush3.bf16.msra.mxu1 %v2221_v46 }
 0x21a   :  { %1834 = vmatprep.subr.bf16.mxu1 %v2223_v48 }
 0x21d   :  { %1835 = vmatpush3.bf16.msra.mxu1 %v2224_v49 }
 0x21e   :  { %1836 = vmatprep.subr.bf16.mxu1 %v2226_v51 }
 0x221   :  { %1837 = vmatpush3.bf16.msra.mxu1 %v2227_v55 }
 0x222   :  { %1838 = vmatprep.subr.bf16.mxu1 %v2229_v58 }
 0x225   :  { %1839 = vmatpush3.bf16.msra.mxu1 %v2230_v59 }
 0x226   :  { %1840 = vmatprep.subr.bf16.mxu1 %v2232_v62 }
 0x229   :  { %1841 = vmatpush3.bf16.msra.mxu1 %v2233_v1 }
 0x22a   :  { %1842 = vmatprep.subr.bf16.mxu1 %v2235_v4 }
 0x22d   :  { %1843 = vmatpush3.bf16.msra.mxu1 %v2236_v5 }
 0x22e   :  { %1844 = vmatprep.subr.bf16.mxu1 %v2238_v8 }
 0x231   :  { %1845 = vmatpush3.bf16.msra.mxu1 %v2239_v11 }
 0x232   :  { %1846 = vmatprep.subr.bf16.mxu1 %v2241_v14 }
 0x235   :  { %1847 = vmatpush3.bf16.msra.mxu1 %v2242_v15 }
 0x236   :  { %2136 = vmatprep.subr.bf16.mxu1 %v2377_v53 }
 0x2eb   :  { %v587_v17 = vpop.f32.mrb[4].mxu1 }
 0x2ec   :  { %v591_v18 = vmul.f32 0.001953125, %v587_v17  ;;  %v1991_v19 = vpop.f32.mrb[5].mxu1 }
 0x2ee   :  { %v592_v21 = vmul.f32 %v591_v18, %v591_v18 }
 0x2f0   :  { %v594_v22 = vrot.slane %v592_v21, 7 }
 0x2f2   :  { %v596_v24 = vsub.f32 %v591_v18, %v594_v22 }
 0x2f4   :  { %v597_v25 = vmax.f32 %v596_v24, 0.0 }
 0x2f6   :  { %v599_v26 = vadd.f32 1e-05, %v597_v25 }
 0x2f8   :  { %2268 = vrsqrt.f32 %v599_v26 }
 0x302   :  { %v2269_v31 = vpop.eup %2268 }
 0x303   :  { %v608_v32 = vrot.slane %v2269_v31, %v2675_v30 }
 0x305   :  { %v609_v34 = vcombine.high %v608_v32, %v608_v32 }
 0x307   :  { %v616_v36 = vrot.slane %v609_v34, %v2675_v30 }
 0x309   :  { %v618_v38 = vmul.f32 %v616_v36, %v598_v35 }
 0x30b   :  { %v620_v41 = vmul.f32 %v618_v38, %v591_v18  ;;  %v626_v42 = vrot.slane %v618_v38, %v2683_v37 }
 0x30d   :  { %v621_v43 = vsub.f32 %v619_v40, %v620_v41  ;;  %v628_v44 = vmul.f32 %v626_v42, %v2652_v20  ;;  %v629_v45 = vmul.f32 %v626_v42, %v2654_v23 }
 0x30f   :  { %v634_v46 = vrot.slane %v621_v43, %v2683_v37 }
 0x311   :  { %v636_v47 = vadd.f32 %v634_v46, %v628_v44  ;;  %v637_v48 = vadd.f32 %v634_v46, %v629_v45 }
 0x313   :  { %vm638_vm12 = vcmp.ge.f32.partialorder %v636_v47, 0.0  ;;  %vm639_vm13 = vcmp.ge.f32.partialorder %v637_v48, 0.0  ;;  %v640_v49 = vmul.f32 0.1, %v636_v47  ;;  %v641_v50 = vmul.f32 0.1, %v637_v48 }
 0x315   :  { %v642_v51 = vsel %vm638_vm12, %v636_v47, %v640_v49  ;;  %v643_v55 = vsel %vm639_vm13, %v637_v48, %v641_v50  ;;  %v2244_v47 = vld [vmem:[#allocation7 + $0x40] sm:$0xff]   ;;  %v2247_v50 = vld [vmem:[#allocation7 + $0x48] sm:$0xff]  }
 0x316   :  { %v644_v56 = vrot.slane %v642_v51, 7  ;;  %v645_v58 = vrot.slane %v643_v55, 7  ;;  %v650_v59 = vrot.slane %v642_v51, 1  ;;  %v651_v61 = vrot.slane %v643_v55, 1  ;;  %v2245_v48 = vld [vmem:[#allocation7] sm:$0xff]   ;;  %1882 = vmatprep.subr.bf16.mxu0 %v2244_v47 }
 0x317   :  { %v657_v62 = vpack.c.bf16 %v643_v55, %v642_v51  ;;  %v2246_v49 = vld [vmem:[#allocation7 + $0x80] sm:$0xff]   ;;  %v2248_v51 = vld [vmem:[#allocation7 + $0x8] sm:$0xff]  }
 0x318   :  { %v646_v20 = vsel %vm136_vm5, %v644_v56, %v645_v58  ;;  %v647_v23 = vsel %vm136_vm5, %v645_v58, %v644_v56  ;;  %v652_v1 = vsel %vm143_vm7, %v650_v59, %v651_v61  ;;  %v653_v2 = vsel %vm143_vm7, %v651_v61, %v650_v59  ;;  %v2249_v55 = vld [vmem:[#allocation7 + $0x88] sm:$0xff]   ;;  %v2250_v56 = vld [vmem:[#allocation7 + $0x50] sm:$0xff]   ;;  %v2253_v61 = vld [vmem:[#allocation7 + $0x58] sm:$0xff]  }
 0x319   :  { %883 = vmatprep.mubr.bf16.mxu1 %v657_v62  ;;  %v1733_v4 = vpack.c.bf16 %v646_v20, %v647_v23  ;;  %v1738_v5 = vpack.c.bf16 %v653_v2, %v652_v1  ;;  %v2251_v58 = vld [vmem:[#allocation7 + $0x10] sm:$0xff]   ;;  %v2254_v62 = vld [vmem:[#allocation7 + $0x18] sm:$0xff]   ;;  %v2256_v23 = vld [vmem:[#allocation7 + $0x60] sm:$0xff]  }
 0x31a   :  { %v2252_v59 = vld [vmem:[#allocation7 + $0x90] sm:$0xff]   ;;  %v2255_v20 = vld [vmem:[#allocation7 + $0x98] sm:$0xff]   ;;  %v2257_v1 = vld [vmem:[#allocation7 + $0x20] sm:$0xff]  }
 0x31b   :  { %1734 = vmatmul.mubr.msk.bf16.vlgmr.msra.gmra.mrb[8].mxu1 %vm2532_vm6, %v1733_v4  ;;  %2009 = vmatmul.mubr.msk.bf16.vlgmr.msra.gmra.mrb[8].mxu0 %vm2542_vm8, %v1738_v5  ;;  %v2258_v2 = vld [vmem:[#allocation7 + $0xa0] sm:$0xff]   ;;  %v2259_v4 = vld [vmem:[#allocation7 + $0x68] sm:$0xff]  }
 0x31c   :  { %2138 = vmatpush3.bf16.msra.mxu1 %v2567_v52  ;;  %2044 = vmatprep.mubr.msk.f32.mxu1 %vm2376_vm0, %v2375_v0  ;;  %v2260_v5 = vld [vmem:[#allocation7 + $0x28] sm:$0xff]  }
 0x31d   :  { %2139 = vmatprep.subr.bf16.mxu1 %v2377_v53  ;;  %1883 = vmatpush3.bf16.msra.mxu0 %v2245_v48 }
 0x31e   :  { %1884 = vmatprep.subr.bf16.mxu0 %v2247_v50 }
 0x320   :  { %2141 = vmatpush3.bf16.msra.mxu1 %v2576_v54 }
 0x321   :  { %2142 = vmatprep.subr.bf16.mxu1 %v2377_v53  ;;  %1885 = vmatpush3.bf16.msra.mxu0 %v2248_v51 }
 0x322   :  { %1886 = vmatprep.subr.bf16.mxu0 %v2250_v56 }
 0x324   :  { %2144 = vmatpush3.bf16.msra.mxu1 %v2591_v57 }
 0x325   :  { %2145 = vmatprep.subr.bf16.mxu1 %v2377_v53  ;;  %1887 = vmatpush3.bf16.msra.mxu0 %v2251_v58 }
 0x326   :  { %1888 = vmatprep.subr.bf16.mxu0 %v2253_v61 }
 0x328   :  { %2147 = vmatpush3.bf16.msra.mxu1 %v2601_v60 }
 0x329   :  { %2148 = vmatprep.subr.bf16.mxu1 %v2377_v53  ;;  %1889 = vmatpush3.bf16.msra.mxu0 %v2254_v62 }
 0x32a   :  { %1890 = vmatprep.subr.bf16.mxu0 %v2256_v23 }
 0x32c   :  { %2150 = vmatpush3.bf16.msra.mxu1 %v2611_v63 }
 0x32d   :  { %2151 = vmatprep.subr.bf16.mxu1 %v2377_v53  ;;  %1891 = vmatpush3.bf16.msra.mxu0 %v2257_v1 }
 0x32e   :  { %1892 = vmatprep.subr.bf16.mxu0 %v2259_v4 }
 0x330   :  { %2153 = vmatpush3.bf16.msra.mxu1 %v2621_v3 }
 0x331   :  { %2154 = vmatprep.subr.bf16.mxu1 %v2377_v53  ;;  %1893 = vmatpush3.bf16.msra.mxu0 %v2260_v5 }
 0x334   :  { %2156 = vmatpush3.bf16.msra.mxu1 %v2630_v6 }
 0x335   :  { %2157 = vmatprep.subr.bf16.mxu1 %v2377_v53 }
 0x338   :  { %2159 = vmatpush3.bf16.msra.mxu1 %v2640_v9 }
 0x339   :  { %2047 = vmatprep.subr.mxu1 %v2375_v0 }
 0x3ee   :  { %v1848_v7 = vpop.f32.mrb[8].mxu1  ;;  %v926_v8 = vpop.f32.mrb[8].mxu0 }
 0x3ef   :  { %v1849_v11 = vpop.f32.mrb[9].mxu1  ;;  %v2010_v13 = vpop.f32.mrb[9].mxu0 }
 0x3f0   :  { %v1850_v14 = vadd.f32 %v1849_v11, %v1848_v7  ;;  %v1851_v15 = vpop.f32.mrb[10].mxu1  ;;  %v929_v16 = vpop.f32.mrb[10].mxu0  ;;  %v2261_v7 = vld [vmem:[#allocation7 + $0xa8] sm:$0xff]   ;;  %v2263_v11 = vld [vmem:[#allocation7 + $0x30] sm:$0xff]  }
 0x3f1   :  { %v1852_v17 = vpop.f32.mrb[11].mxu1  ;;  %v2011_v18 = vpop.f32.mrb[11].mxu0  ;;  %v2264_v13 = vld [vmem:[#allocation7 + $0xb0] sm:$0xff]  }
 0x3f2   :  { %v2722_v19 = vadd.f32 %v1850_v14, %v926_v8  ;;  %v1853_v21 = vadd.f32 %v1852_v17, %v1851_v15  ;;  %v2262_v8 = vld [vmem:[#allocation7 + $0x70] sm:$0xff]   ;;  %v2265_v14 = vld [vmem:[#allocation7 + $0x78] sm:$0xff]  }
 0x3f3   :  { %1894 = vmatprep.subr.bf16.mxu0 %v2262_v8  ;;  %v2266_v15 = vld [vmem:[#allocation7 + $0x38] sm:$0xff]  }
 0x3f4   :  { %v2724_v22 = vadd.f32 %v1853_v21, %v929_v16  ;;  %v940_v24 = vmul.f32 %v2722_v19, %v2722_v19  ;;  %1895 = vmatpush3.bf16.msra.mxu0 %v2263_v11  ;;  %v2267_v16 = vld [vmem:[#allocation7 + $0xb8] sm:$0xff]  }
 0x3f5   :  { %1896 = vmatprep.subr.bf16.mxu0 %v2265_v14 }
 0x3f6   :  { %v933_v25 = vadd.f32 %v2724_v22, %v2722_v19  ;;  %v941_v26 = vmul.f32 %v2724_v22, %v2724_v22 }
 0x3f8   :  { %v934_v27 = vrot.slane %v933_v25, 4  ;;  %v942_v28 = vadd.f32 %v941_v26, %v940_v24  ;;  %1897 = vmatpush3.bf16.msra.mxu0 %v2266_v15 }
 0x3f9   :  { %2160 = vmatprep.subr.bf16.mxu0 %v2377_v53 }
 0x3fa   :  { %v935_v29 = vadd.f32 %v934_v27, %v933_v25  ;;  %v943_v31 = vrot.slane %v942_v28, 4 }
 0x3fc   :  { %v936_v32 = vrot.slane %v935_v29, 2  ;;  %v944_v34 = vadd.f32 %v943_v31, %v942_v28 }
 0x3fe   :  { %v937_v35 = vadd.f32 %v936_v32, %v935_v29  ;;  %v945_v36 = vrot.slane %v944_v34, 2 }
 0x400   :  { %v938_v38 = vrot.slane %v937_v35, 1  ;;  %v946_v40 = vadd.f32 %v945_v36, %v944_v34  ;;  %v1100_v34 = vld [vmem:[%s2833_s8] sm:$0x1] }
 0x402   :  { %v947_v41 = vrot.slane %v946_v40, 1  ;;  %v939_v42 = vadd.f32 %v938_v38, %v937_v35  ;;  %v1121_v38 = vld [vmem:[%s2834_s9] sm:$0x1] }
 0x404   :  { %v948_v43 = vadd.f32 %v947_v41, %v946_v40 }
 0x406   :  { %v949_v44 = vsel %vm441_vm10, %v939_v42, %v948_v43 }
 0x407   :  { %2045 = vmatmul.mubr.f32.vlgmr.msra.gmra.mrb[6].mxu1 %v949_v44 }
 0x408   :  { %2048 = vmatpush3.msk.msra.mxu1 %vm517_vm9, %v2648_v10  ;;  %2049 = vmatprep.mubr.msk.f32.mxu1 %vm2376_vm0, %v2375_v0 }
 0x409   :  { %2052 = vmatprep.subr.bf16.mxu1 %v2375_v0 }
 0x4da   :  { %v1016_v45 = vpop.f32.mrb[6].mxu1 }
 0x4db   :  { %v2046_v46 = vpop.f32.mrb[7].mxu1  ;;  %2050 = vmatmul.mubr.msk.f32.vlgmr.msra.gmra.mrb[12].mxu1 %vm513_vm11, %v1016_v45 }
 0x4dc   :  { %2068 = vmatprep.mubr.msk.bf16.mxu1 %vm2376_vm0, %v2375_v0  ;;  %2053 = vmatpush3.bf16.msra.mxu1 %v2246_v49 }
 0x4dd   :  { %2054 = vmatprep.subr.bf16.mxu1 %v2375_v0 }
 0x4e0   :  { %2055 = vmatpush3.bf16.msra.mxu1 %v2249_v55 }
 0x4e1   :  { %2056 = vmatprep.subr.bf16.mxu1 %v2375_v0 }
 0x4e4   :  { %2057 = vmatpush3.bf16.msra.mxu1 %v2252_v59 }
 0x4e5   :  { %2058 = vmatprep.subr.bf16.mxu1 %v2375_v0 }
 0x4e8   :  { %2059 = vmatpush3.bf16.msra.mxu1 %v2255_v20 }
 0x4e9   :  { %2060 = vmatprep.subr.bf16.mxu1 %v2375_v0 }
 0x4ec   :  { %2061 = vmatpush3.bf16.msra.mxu1 %v2258_v2 }
 0x4ed   :  { %2062 = vmatprep.subr.bf16.mxu1 %v2375_v0 }
 0x4f0   :  { %2063 = vmatpush3.bf16.msra.mxu1 %v2261_v7 }
 0x4f1   :  { %2064 = vmatprep.subr.bf16.mxu1 %v2375_v0 }
 0x4f4   :  { %2065 = vmatpush3.bf16.msra.mxu1 %v2264_v13 }
 0x4f5   :  { %2066 = vmatprep.subr.bf16.mxu1 %v2375_v0 }
 0x4f8   :  { %2067 = vmatpush3.bf16.msra.mxu1 %v2267_v16 }
 0x4f9   :  { %2107 = vmatprep.subr.mxu1 %v2375_v0 }
 0x5ae   :  { %v1089_v17 = vpop.f32.mrb[12].mxu1 }
 0x5af   :  { %v1093_v18 = vmul.f32 0.001953125, %v1089_v17  ;;  %v2051_v21 = vpop.f32.mrb[13].mxu1 }
 0x5b1   :  { %v1094_v24 = vmul.f32 %v1093_v18, %v1093_v18 }
 0x5b3   :  { %v1096_v25 = vrot.slane %v1094_v24, 7 }
 0x5b5   :  { %v1098_v26 = vsub.f32 %v1093_v18, %v1096_v25 }
 0x5b7   :  { %v1099_v27 = vmax.f32 %v1098_v26, 0.0 }
 0x5b9   :  { %v1101_v28 = vadd.f32 1e-05, %v1099_v27 }
 0x5bb   :  { %2270 = vrsqrt.f32 %v1101_v28 }
 0x5c5   :  { %v2271_v29 = vpop.eup %2270 }
 0x5c6   :  { %v1110_v31 = vrot.slane %v2271_v29, %v2675_v30 }
 0x5c8   :  { %v1111_v32 = vcombine.high %v1110_v31, %v1110_v31 }
 0x5ca   :  { %v1118_v35 = vrot.slane %v1111_v32, %v2675_v30 }
 0x5cc   :  { %v1120_v36 = vmul.f32 %v1118_v35, %v1100_v34 }
 0x5ce   :  { %v1122_v40 = vmul.f32 %v1120_v36, %v1093_v18  ;;  %v1128_v41 = vrot.slane %v1120_v36, %v2683_v37 }
 0x5d0   :  { %v1123_v42 = vsub.f32 %v1121_v38, %v1122_v40  ;;  %v1130_v43 = vmul.f32 %v1128_v41, %v2722_v19  ;;  %v1131_v44 = vmul.f32 %v1128_v41, %v2724_v22 }
 0x5d2   :  { %v1136_v45 = vrot.slane %v1123_v42, %v2683_v37 }
 0x5d4   :  { %v1138_v46 = vadd.f32 %v1136_v45, %v1130_v43  ;;  %v1139_v47 = vadd.f32 %v1136_v45, %v1131_v44  ;;  %v1602_v43 = vld [vmem:[%s2835_s10] sm:$0x1] }
 0x5d6   :  { %vm1140_vm14 = vcmp.ge.f32.partialorder %v1138_v46, 0.0  ;;  %vm1141_vm15 = vcmp.ge.f32.partialorder %v1139_v47, 0.0  ;;  %v1142_v48 = vmul.f32 0.1, %v1138_v46  ;;  %v1143_v49 = vmul.f32 0.1, %v1139_v47 }
 0x5d8   :  { %v1144_v50 = vsel %vm1140_vm14, %v1138_v46, %v1142_v48  ;;  %v1145_v51 = vsel %vm1141_vm15, %v1139_v47, %v1143_v49  ;;  %v1623_v46 = vld [vmem:[%s2836_s11] sm:$0x1]  ;;  %s2379_s11 = smov [#allocation8]  }
 0x5d9   :  { %v1146_v55 = vrot.slane %v1144_v50, 7  ;;  %v1147_v56 = vrot.slane %v1145_v51, 7  ;;  %v1152_v58 = vrot.slane %v1144_v50, 1  ;;  %v1153_v59 = vrot.slane %v1145_v51, 1  ;;  %s1657_s27 = sshll.u32 %s2379_s11, 4  ;;  %s1658_s27 = int_to_ptr.vmem [resolvable:$true] %s1657_s27 }
 0x5da   :  { %v1159_v61 = vpack.c.bf16 %v1145_v51, %v1144_v50  ;;  %s2342_s28 = scalar_lea.vmem %s1658_s27, 256  ;;  %p2347_p11 = scmp.lt.s32.totalorder %s1658_s27, %s1658_s27 }
 0x5db   :  { %v1148_v19 = vsel %vm136_vm5, %v1146_v55, %v1147_v56  ;;  %v1149_v22 = vsel %vm136_vm5, %v1147_v56, %v1146_v55  ;;  %v1154_v62 = vsel %vm143_vm7, %v1152_v58, %v1153_v59  ;;  %v1155_v20 = vsel %vm143_vm7, %v1153_v59, %v1152_v58  ;;  %v2274_v59 = vld [vmem:[%s2825_s0] sm:$0xff]  ;;  %p2343_p10 = scmp.ne.s32.totalorder %s1658_s27, %s2342_s28  ;;  %p2348_p12 = scmp.lt.s32.totalorder %s2342_s28, %s2342_s28 }
 0x5dc   :  { %1385 = vmatprep.mubr.bf16.mxu0 %v1159_v61  ;;  %v1769_v23 = vpack.c.bf16 %v1148_v19, %v1149_v22  ;;  %v1774_v1 = vpack.c.bf16 %v1155_v20, %v1154_v62  ;;  %v2275_v61 = vld [vmem:[%s2825_s0 + $0x8] sm:$0xff] }
 0x5dd   :  { %p2349_p13 = por %p2348_p12, %p2347_p11 }
 0x5de   :  { %1770 = vmatmul.mubr.msk.bf16.vlgmr.msra.gmra.mrb[12].mxu0 %vm2532_vm6, %v1769_v23  ;;  %2069 = vmatmul.mubr.msk.bf16.vlgmr.msra.gmra.mrb[16].mxu1 %vm2542_vm8, %v1774_v1 }
 0x5df   :  { %2162 = vmatpush3.bf16.msra.mxu0 %v2567_v52  ;;  %2104 = vmatprep.mubr.msk.f32.mxu0 %vm2376_vm0, %v2375_v0  ;;  %p2350_p0 = pnand %p2349_p13, %p2343_p10 }
 0x5e0   :  { %2163 = vmatprep.subr.bf16.mxu0 %v2377_v53  ;;  %2108 = vmatpush3.msk.msra.mxu1 %vm517_vm9, %v2648_v10 }
 0x5e1   :  { %2109 = vmatprep.mubr.msk.f32.mxu1 %vm2376_vm0, %v2375_v0 }
 0x5e3   :  { %2165 = vmatpush3.bf16.msra.mxu0 %v2576_v54 }
 0x5e4   :  { %2166 = vmatprep.subr.bf16.mxu0 %v2377_v53 }
 0x5e7   :  { %2168 = vmatpush3.bf16.msra.mxu0 %v2591_v57 }
 0x5e8   :  { %2169 = vmatprep.subr.bf16.mxu0 %v2377_v53 }
 0x5eb   :  { %2171 = vmatpush3.bf16.msra.mxu0 %v2601_v60 }
 0x5ec   :  { %2172 = vmatprep.subr.bf16.mxu0 %v2377_v53 }
 0x5ef   :  { %2174 = vmatpush3.bf16.msra.mxu0 %v2611_v63 }
 0x5f0   :  { %2175 = vmatprep.subr.bf16.mxu0 %v2377_v53 }
 0x5f3   :  { %2177 = vmatpush3.bf16.msra.mxu0 %v2621_v3 }
 0x5f4   :  { %2178 = vmatprep.subr.bf16.mxu0 %v2377_v53 }
 0x5f7   :  { %2180 = vmatpush3.bf16.msra.mxu0 %v2630_v6 }
 0x5f8   :  { %2181 = vmatprep.subr.bf16.mxu0 %v2377_v53 }
 0x5fb   :  { %2183 = vmatpush3.bf16.msra.mxu0 %v2640_v9 }
 0x6b1   :  { %v1898_v0 = vpop.f32.mrb[12].mxu0  ;;  %v1428_v12 = vpop.f32.mrb[16].mxu1 }
 0x6b2   :  { %v1899_v33 = vpop.f32.mrb[13].mxu0  ;;  %v2070_v39 = vpop.f32.mrb[17].mxu1 }
 0x6b3   :  { %v1900_v52 = vadd.f32 %v1899_v33, %v1898_v0  ;;  %v1901_v54 = vpop.f32.mrb[14].mxu0  ;;  %v1431_v57 = vpop.f32.mrb[18].mxu1 }
 0x6b4   :  { %v1902_v60 = vpop.f32.mrb[15].mxu0  ;;  %v2071_v63 = vpop.f32.mrb[19].mxu1 }
 0x6b5   :  { %v1429_v10 = vadd.f32 %v1900_v52, %v1428_v12  ;;  %v1903_v2 = vadd.f32 %v1902_v60, %v1901_v54 }
 0x6b7   :  { %v1432_v3 = vadd.f32 %v1903_v2, %v1431_v57  ;;  %v1442_v4 = vmul.f32 %v1429_v10, %v1429_v10 }
 0x6b9   :  { %v1435_v5 = vadd.f32 %v1432_v3, %v1429_v10  ;;  %v1443_v7 = vmul.f32 %v1432_v3, %v1432_v3 }
 0x6bb   :  { %v1436_v6 = vrot.slane %v1435_v5, 4  ;;  %v1444_v8 = vadd.f32 %v1443_v7, %v1442_v4 }
 0x6bd   :  { %v1437_v53 = vadd.f32 %v1436_v6, %v1435_v5  ;;  %v1445_v11 = vrot.slane %v1444_v8, 4 }
 0x6bf   :  { %v1438_v9 = vrot.slane %v1437_v53, 2  ;;  %v1446_v13 = vadd.f32 %v1445_v11, %v1444_v8 }
 0x6c1   :  { %v1439_v14 = vadd.f32 %v1438_v9, %v1437_v53  ;;  %v1447_v15 = vrot.slane %v1446_v13, 2 }
 0x6c3   :  { %v1440_v16 = vrot.slane %v1439_v14, 1  ;;  %v1448_v17 = vadd.f32 %v1447_v15, %v1446_v13 }
 0x6c5   :  { %v1449_v18 = vrot.slane %v1448_v17, 1  ;;  %v1441_v21 = vadd.f32 %v1440_v16, %v1439_v14 }
 0x6c7   :  { %v1450_v24 = vadd.f32 %v1449_v18, %v1448_v17 }
 0x6c9   :  { %v1451_v25 = vsel %vm441_vm10, %v1441_v21, %v1450_v24 }
 0x6ca   :  { %2105 = vmatmul.mubr.f32.vlgmr.msra.gmra.mrb[6].mxu0 %v1451_v25 }
 0x79d   :  { %v1518_v26 = vpop.f32.mrb[6].mxu0 }
 0x79e   :  { %v2106_v27 = vpop.f32.mrb[7].mxu0  ;;  %2110 = vmatmul.mubr.msk.f32.vlgmr.msra.gmra.mrb[14].mxu1 %vm513_vm11, %v1518_v26 }
 0x871   :  { %v1591_v28 = vpop.f32.mrb[14].mxu1 }
 0x872   :  { %v1595_v29 = vmul.f32 0.001953125, %v1591_v28  ;;  %v2111_v31 = vpop.f32.mrb[15].mxu1 }
 0x874   :  { %v1596_v32 = vmul.f32 %v1595_v29, %v1595_v29 }
 0x876   :  { %v1598_v34 = vrot.slane %v1596_v32, 7 }
 0x878   :  { %v1600_v35 = vsub.f32 %v1595_v29, %v1598_v34 }
 0x87a   :  { %v1601_v36 = vmax.f32 %v1600_v35, 0.0 }
 0x87c   :  { %v1603_v38 = vadd.f32 1e-05, %v1601_v36 }
 0x87e   :  { %2272 = vrsqrt.f32 %v1603_v38 }
 0x888   :  { %v2273_v40 = vpop.eup %2272 }
 0x889   :  { %v1612_v41 = vrot.slane %v2273_v40, %v2675_v30 }
 0x88b   :  { %v1613_v42 = vcombine.high %v1612_v41, %v1612_v41 }
 0x88d   :  { %v1620_v44 = vrot.slane %v1613_v42, %v2675_v30 }
 0x88f   :  { %v1622_v45 = vmul.f32 %v1620_v44, %v1602_v43 }
 0x891   :  { %v1624_v47 = vmul.f32 %v1622_v45, %v1595_v29  ;;  %v1630_v48 = vrot.slane %v1622_v45, %v2683_v37 }
 0x893   :  { %v1625_v49 = vsub.f32 %v1623_v46, %v1624_v47  ;;  %v1632_v50 = vmul.f32 %v1630_v48, %v1429_v10  ;;  %v1633_v51 = vmul.f32 %v1630_v48, %v1432_v3 }
 0x895   :  { %v1638_v55 = vrot.slane %v1625_v49, %v2683_v37 }
 0x897   :  { %v1640_v56 = vadd.f32 %v1638_v55, %v1632_v50  ;;  %v1641_v58 = vadd.f32 %v1638_v55, %v1633_v51 }
 0x899   :  { %v1642_v30 = vadd.f32 %v2274_v59, %v1640_v56  ;;  %v1643_v19 = vadd.f32 %v2275_v61, %v1641_v58 }
 0x89b   :  { %vm1644_vm0 = vcmp.ge.f32.partialorder %v1642_v30, 0.0  ;;  %vm1645_vm1 = vcmp.ge.f32.partialorder %v1643_v19, 0.0  ;;  %v1646_v22 = vmul.f32 0.1, %v1642_v30  ;;  %v1647_v62 = vmul.f32 0.1, %v1643_v19 }
 0x89d   :  { %v1648_v37 = vsel %vm1644_vm0, %v1642_v30, %v1646_v22  ;;  %v1649_v20 = vsel %vm1645_vm1, %v1643_v19, %v1647_v62 }
 0x89e   :  { %1650 = vst [vmem:[#allocation8] sm:$0xff] %v1648_v37  ;;  %1651 = vst [vmem:[#allocation8 + $0x8] sm:$0xff] %v1649_v20 }
 0x89f   :  { %2353 = shalt.err (!%p2350_p0)
}
 0x8a0   :  { %s2354_s22 = scalar_lea.hbm %s2837_s12, 256 }
 0x8a1   :  { %p2355_p1 = scmp.ne.s32.totalorder %s2837_s12, %s2354_s22  ;;  %p2358_p2 = scmp.lt.u32.totalorder %s2354_s22, %s2837_s12 }
 0x8a3   :  { %p2360_p3 = pnand %p2358_p2, %p2355_p1 }
 0x8a5   :  { %2363 = shalt.err (!%p2360_p3)
}
 0x8a6   :  { %s2380_s17 = smov 128   ;;  %s2381_s18 = smov 8  }
 0x8a7   :  { %1663 = dma.vmem_to_hbm [thread:$0]  %s1658_s27, 256, %s2837_s12, [#allocation4], %s2380_s17, %s2380_s17, %s2381_s18  }
 0x8a8   :  { %2368 = dma.done.wait [#allocation4], 256  }
 0x8a9   :  { %2369 = vsyncadd [#allocation4], 4294967040 }
 0x8aa   :  { %1667 = vsyncpa [#allocation3], 1 }
 0x8ab   :  { %1668 = vsyncpa [#allocation6], 1 }
 0x8ac   :  { %1669 = vsyncpa [#allocation4], 1 }

</bundles_post_ra>
